<compile_context>
chip_gen: v6e
topology: v6e:2x2x1
jax: 0.10.0
libtpu: 0.0.40
codegen_flags: <defaults>
</compile_context>

<pallas_src>
import jax
import jax.numpy as jnp
from jax import lax
from jax.experimental import pallas as pl
from jax.experimental.pallas import tpu as pltpu


def _round_up(x, m):
    return ((x + m - 1) // m) * m


def fp8_linear_kernel(x_ref, w_ref, b_ref, o_ref):
    # x_ref: (tm, tk) bf16       w_ref: (tn, tk) float8_e4m3fn (native Linear layout)
    # b_ref: (1, tn)  f32        o_ref: (tm, tn) f32  (resident accumulator across k)
    k = pl.program_id(2)

    @pl.when(k == 0)
    def _():
        # Initialize the resident output block with the bias (added exactly once).
        o_ref[...] = jnp.broadcast_to(b_ref[...], o_ref.shape)

    x = x_ref[...]
    # In-kernel dequant: fp8 -> bf16 (weight stays 1 B/elem in HBM & VMEM, bf16 MXU rate).
    # TODO(synk): on v7x the MXU consumes fp8 natively; drop this cast there (gate on
    # chip version) once bf16 x fp8 mixed-operand lowering is verified. On v5e, if the
    # cast becomes the binding VALU slot, consider an int8 weight path instead.
    w = w_ref[...].astype(jnp.bfloat16)

    # Contract over the shared K axis; weight kept untransposed ([N, K]).
    o_ref[...] += lax.dot_general(
        x, w,
        dimension_numbers=(((1,), (1,)), ((), ())),
        preferred_element_type=jnp.float32,
    )


def fp8_linear(x, w_fp8, b, *, bm=512, bn=1024, bk=1024):
    """x: [B, S, K] float/bf16, w_fp8: [N, K] float8_e4m3fn, b: [N] -> [B, S, N] f32."""
    B, S, K = x.shape
    N, K_w = w_fp8.shape
    assert K == K_w
    M = B * S

    # Tile sizes: full-dim block for small dims (exempt from the (8,128) rule),
    # otherwise the base tile; remainders are zero-padded (exact for the dot).
    tm = M if M <= bm else bm
    tn = N if N <= bn else bn
    tk = K if K <= bk else bk

    # Megacore / v7x (2 TC): if M collapses to a single tile (decode-like shapes),
    # split N into >= 2 tiles so both TensorCores get parallel work.
    if M <= bm and 256 < N <= bn:
        tn = _round_up(pl.cdiv(N, 2), 128)   # multiple of 128 (also satisfies fp8 32-sublane packing)

    Mp, Np, Kp = _round_up(M, tm), _round_up(N, tn), _round_up(K, tk)

    # Activations: keep bf16 end-to-end (cast is a no-op if x already is bf16).
    # TODO(synk): feed bf16 activations from the producer op so XLA fuses the cast
    # instead of adding an extra HBM pass here for memory-bound shapes.
    x2d = x.reshape(M, K)
    if x2d.dtype != jnp.bfloat16:
        x2d = x2d.astype(jnp.bfloat16)
    if (Mp, Kp) != (M, K):
        x2d = jnp.pad(x2d, ((0, Mp - M), (0, Kp - K)))

    # Weight/bias are static module parameters: pad ops are only emitted when the
    # shapes are not tile-aligned. TODO(synk): hoist/cache this padding (and an
    # optional one-time [K, N] transpose) at quantization time to avoid per-call passes.
    w = w_fp8
    if (Np, Kp) != (N, K):
        w = jnp.pad(w, ((0, Np - N), (0, Kp - K)))
    b2d = b.astype(jnp.float32).reshape(1, N)
    if Np != N:
        b2d = jnp.pad(b2d, ((0, 0), (0, Np - N)))

    gi, gj, gk = Mp // tm, Np // tn, Kp // tk
    grid = (gi, gj, gk)

    # Realistic HBM traffic (with re-streaming factors) for XLA's scheduler.
    cost = pl.CostEstimate(
        flops=2 * M * N * K,
        transcendentals=0,
        bytes_accessed=gj * Mp * Kp * 2 + gi * Np * Kp * 1 + Mp * Np * 4 + Np * 4,
    )

    # VMEM budget: double-buffered x + out, (up to) triple-buffered fp8 weight.
    n_wbuf = 3 if gi * gj * gk >= 3 else 2
    vmem_need = (2 * tm * tk * 2) + (n_wbuf * tn * tk * 1) + (2 * tm * tn * 4) + (2 * tn * 4)
    try:
        phys_vmem = getattr(pltpu.get_tpu_info(), "vmem_capacity_bytes", None)
    except Exception:
        phys_vmem = None
    phys_vmem = phys_vmem or (64 << 20)   # conservative default = v7x per-TC VMEM
    vmem_limit = int(min(max(32 << 20, vmem_need + (8 << 20)), phys_vmem * 3 // 4))

    def build(w_bufs):
        if w_bufs > 2:
            w_spec = pl.BlockSpec((tn, tk), lambda i, j, k: (j, k),
                                  pipeline_mode=pl.Buffered(w_bufs))
        else:
            w_spec = pl.BlockSpec((tn, tk), lambda i, j, k: (j, k))
        return pl.pallas_call(
            fp8_linear_kernel,
            out_shape=jax.ShapeDtypeStruct((Mp, Np), jnp.float32),
            grid_spec=pltpu.PrefetchScalarGridSpec(
                num_scalar_prefetch=0,
                grid=grid,
                in_specs=[
                    pl.BlockSpec((tm, tk), lambda i, j, k: (i, k)),   # bf16 activations
                    w_spec,                                           # fp8 weight, native [N, K]
                    pl.BlockSpec((1, tn), lambda i, j, k: (0, j)),    # bias (indexed by N only)
                ],
                out_specs=pl.BlockSpec((tm, tn), lambda i, j, k: (i, j)),
            ),
            compiler_params=pltpu.CompilerParams(
                dimension_semantics=("parallel", "parallel", "arbitrary"),
                vmem_limit_bytes=vmem_limit,
            ),
            cost_estimate=cost,
        )

    try:
        out2d = build(n_wbuf)(x2d, w, b2d)
    except Exception:
        # Fallback to default double-buffering if deeper weight buffering is unsupported.
        out2d = build(2)(x2d, w, b2d)

    if (Mp, Np) != (M, N):
        out2d = out2d[:M, :N]
    return out2d.reshape(B, S, N)


if __name__ == "__main__":
    # --- Small demo consistent with FP8Module(nn.Linear(H, H)) ---
    B, S, H = 2, 8, 32

    key = jax.random.PRNGKey(0)
    kx, kw, kb = jax.random.split(key, 3)

    x = jax.random.normal(kx, (B, S, H), dtype=jnp.float32)
    w_f32 = jax.random.normal(kw, (H, H), dtype=jnp.float32) * (1.0 / jnp.sqrt(H))
    b = jax.random.normal(kb, (H,), dtype=jnp.float32) * 0.01

    # FP8Module._convert_params_to_fp8: weight -> float8_e4m3fn, bias excluded.
    w_fp8 = w_f32.astype(jnp.float8_e4m3fn)

    out = jax.block_until_ready(fp8_linear(x, w_fp8, b))

    # Reference with matching numerics (bf16 activations, fp8-dequant weight).
    x_bf = x.astype(jnp.bfloat16).astype(jnp.float32)
    ref = jnp.einsum("bsh,oh->bso", x_bf, w_fp8.astype(jnp.float32)) + b
    assert out.shape == (B, S, H)
    assert jnp.allclose(out, ref, atol=2e-3, rtol=2e-3)

    # --- Check exercising the real tiled path (grid 4x2x2, K accumulation into o_ref) ---
    B2, S2, H2 = 2, 256, 512
    kx2, kw2, kb2 = jax.random.split(jax.random.PRNGKey(1), 3)
    x2 = jax.random.normal(kx2, (B2, S2, H2), dtype=jnp.float32)
    w2 = (jax.random.normal(kw2, (H2, H2), dtype=jnp.float32)
          * (1.0 / jnp.sqrt(H2))).astype(jnp.float8_e4m3fn)
    b2 = jax.random.normal(kb2, (H2,), dtype=jnp.float32) * 0.01

    out2 = jax.block_until_ready(fp8_linear(x2, w2, b2, bm=128, bn=256, bk=256))
    x2_bf = x2.astype(jnp.bfloat16).astype(jnp.float32)
    ref2 = jnp.einsum("bsh,oh->bso", x2_bf, w2.astype(jnp.float32)) + b2
    assert out2.shape == (B2, S2, H2)
    assert jnp.allclose(out2, ref2, atol=5e-3, rtol=5e-3)

    # --- Decode-like shape: single-M tile, N split so both TensorCores get work ---
    B3, S3, H3 = 1, 8, 512
    kx3, kw3, kb3 = jax.random.split(jax.random.PRNGKey(2), 3)
    x3 = jax.random.normal(kx3, (B3, S3, H3), dtype=jnp.float32)
    w3 = (jax.random.normal(kw3, (H3, H3), dtype=jnp.float32)
          * (1.0 / jnp.sqrt(H3))).astype(jnp.float8_e4m3fn)
    b3 = jax.random.normal(kb3, (H3,), dtype=jnp.float32) * 0.01

    out3 = jax.block_until_ready(fp8_linear(x3, w3, b3))
    x3_bf = x3.astype(jnp.bfloat16).astype(jnp.float32)
    ref3 = jnp.einsum("bsh,oh->bso", x3_bf, w3.astype(jnp.float32)) + b3
    assert out3.shape == (B3, S3, H3)
    assert jnp.allclose(out3, ref3, atol=5e-3, rtol=5e-3)

    print("KERNEL_OK")
</pallas_src>

<mosaic_0001>
module attributes {stable_mosaic.version = 11 : i64} {
  func.func @fp8_linear_kernel(%arg0: i32, %arg1: i32, %arg2: i32, %arg3: memref<16x32xbf16, #tpu.memory_space<vmem>>, %arg4: memref<32x32xf8E4M3FN, #tpu.memory_space<vmem>>, %arg5: memref<1x32xf32, #tpu.memory_space<vmem>>, %arg6: memref<16x32xf32, #tpu.memory_space<vmem>>) attributes {dimension_semantics = [#tpu.dimension_semantics<parallel>, #tpu.dimension_semantics<parallel>, #tpu.dimension_semantics<arbitrary>], iteration_bounds = array<i64: 1, 1, 1>, scalar_prefetch = 0 : i64, scratch_operands = 0 : i64, tpu.core_type = #tpu.core_type<tc>, window_params = [{transform_indices = @transform_0, window_bounds = array<i64: 16, 32>}, {transform_indices = @transform_1, window_bounds = array<i64: 32, 32>}, {transform_indices = @transform_2, window_bounds = array<i64: 1, 32>}, {transform_indices = @transform_3, window_bounds = array<i64: 16, 32>}]} {
    %c0_i32 = arith.constant 0 : i32
    %0 = arith.cmpi eq, %arg2, %c0_i32 : i32
    %1 = arith.extui %0 : i1 to i32
    %c0_i32_0 = arith.constant 0 : i32
    %2 = arith.cmpi ne, %1, %c0_i32_0 : i32
    scf.if %2 {
      %c0_8 = arith.constant 0 : index
      %c0_9 = arith.constant 0 : index
      %10 = vector.load %arg5[%c0_8, %c0_9] : memref<1x32xf32, #tpu.memory_space<vmem>>, vector<1x32xf32>
      %11 = vector.shape_cast %10 : vector<1x32xf32> to vector<1x32xf32>
      %12 = vector.broadcast %11 : vector<1x32xf32> to vector<16x32xf32>
      %c0_10 = arith.constant 0 : index
      %c0_11 = arith.constant 0 : index
      %13 = vector.load %arg6[%c0_10, %c0_11] : memref<16x32xf32, #tpu.memory_space<vmem>>, vector<16x32xf32>
      tpu.vector_store %arg6[%c0_10, %c0_11], %12 {strides = array<i32>} : memref<16x32xf32, #tpu.memory_space<vmem>>, vector<16x32xf32>,
    } else {
    }
    %c0 = arith.constant 0 : index
    %c0_1 = arith.constant 0 : index
    %3 = vector.load %arg3[%c0, %c0_1] : memref<16x32xbf16, #tpu.memory_space<vmem>>, vector<16x32xbf16>
    %c0_2 = arith.constant 0 : index
    %c0_3 = arith.constant 0 : index
    %4 = vector.load %arg4[%c0_2, %c0_3] : memref<32x32xf8E4M3FN, #tpu.memory_space<vmem>>, vector<32x32xf8E4M3FN>
    %5 = arith.extf %4 : vector<32x32xf8E4M3FN> to vector<32x32xbf16>
    %c0_4 = arith.constant 0 : index
    %c0_5 = arith.constant 0 : index
    %6 = vector.load %arg6[%c0_4, %c0_5] : memref<16x32xf32, #tpu.memory_space<vmem>>, vector<16x32xf32>
    %cst = arith.constant dense<0.000000e+00> : vector<16x32xf32>
    %7 = tpu.matmul %3, %5, %cst {dimension_numbers = #tpu.dot_dimension_numbers<[1], [1], [0], [0], [0, 0, 1, 0], [], []>} : vector<16x32xbf16>, vector<32x32xbf16>, vector<16x32xf32> -> vector<16x32xf32>
    %8 = arith.addf %6, %7 : vector<16x32xf32>
    %c0_6 = arith.constant 0 : index
    %c0_7 = arith.constant 0 : index
    %9 = vector.load %arg6[%c0_6, %c0_7] : memref<16x32xf32, #tpu.memory_space<vmem>>, vector<16x32xf32>
    tpu.vector_store %arg6[%c0_6, %c0_7], %8 {strides = array<i32>} : memref<16x32xf32, #tpu.memory_space<vmem>>, vector<16x32xf32>,
    return
  }
  func.func @transform_0(%arg0: i32, %arg1: i32, %arg2: i32) -> (i32, i32) {
    %c0_i32 = arith.constant 0 : i32
    return %arg0, %arg2 : i32, i32
  }
  func.func @transform_1(%arg0: i32, %arg1: i32, %arg2: i32) -> (i32, i32) {
    %c0_i32 = arith.constant 0 : i32
    return %arg1, %arg2 : i32, i32
  }
  func.func @transform_2(%arg0: i32, %arg1: i32, %arg2: i32) -> (i32, i32) {
    %c0_i32 = arith.constant 0 : i32
    %c0_i32_0 = arith.constant 0 : i32
    return %c0_i32, %arg1 : i32, i32
  }
  func.func @transform_3(%arg0: i32, %arg1: i32, %arg2: i32) -> (i32, i32) {
    %c0_i32 = arith.constant 0 : i32
    return %arg0, %arg1 : i32, i32
  }
}

module attributes {stable_mosaic.version = 11 : i64} {
  func.func @fp8_linear_kernel(%arg0: i32, %arg1: i32, %arg2: i32, %arg3: memref<16x32xbf16, #tpu.memory_space<vmem>>, %arg4: memref<32x32xf8E4M3FN, #tpu.memory_space<vmem>>, %arg5: memref<1x32xf32, #tpu.memory_space<vmem>>, %arg6: memref<16x32xf32, #tpu.memory_space<vmem>>) attributes {dimension_semantics = [#tpu.dimension_semantics<parallel>, #tpu.dimension_semantics<parallel>, #tpu.dimension_semantics<arbitrary>], iteration_bounds = array<i64: 1, 1, 1>, scalar_prefetch = 0 : i64, scratch_operands = 0 : i64, tpu.core_type = #tpu.core_type<tc>, window_params = [{transform_indices = @transform_0, window_bounds = array<i64: 16, 32>}, {transform_indices = @transform_1, window_bounds = array<i64: 32, 32>}, {transform_indices = @transform_2, window_bounds = array<i64: 1, 32>}, {transform_indices = @transform_3, window_bounds = array<i64: 16, 32>}]} {
    %c0_i32 = arith.constant 0 : i32
    %0 = arith.cmpi eq, %arg2, %c0_i32 : i32
    %1 = arith.extui %0 : i1 to i32
    %c0_i32_0 = arith.constant 0 : i32
    %2 = arith.cmpi ne, %1, %c0_i32_0 : i32
    scf.if %2 {
      %c0_8 = arith.constant 0 : index
      %c0_9 = arith.constant 0 : index
      %10 = vector.load %arg5[%c0_8, %c0_9] : memref<1x32xf32, #tpu.memory_space<vmem>>, vector<1x32xf32>
      %11 = vector.shape_cast %10 : vector<1x32xf32> to vector<1x32xf32>
      %12 = vector.broadcast %11 : vector<1x32xf32> to vector<16x32xf32>
      %c0_10 = arith.constant 0 : index
      %c0_11 = arith.constant 0 : index
      %13 = vector.load %arg6[%c0_10, %c0_11] : memref<16x32xf32, #tpu.memory_space<vmem>>, vector<16x32xf32>
      tpu.vector_store %arg6[%c0_10, %c0_11], %12 {strides = array<i32>} : memref<16x32xf32, #tpu.memory_space<vmem>>, vector<16x32xf32>,
    } else {
    }
    %c0 = arith.constant 0 : index
    %c0_1 = arith.constant 0 : index
    %3 = vector.load %arg3[%c0, %c0_1] : memref<16x32xbf16, #tpu.memory_space<vmem>>, vector<16x32xbf16>
    %c0_2 = arith.constant 0 : index
    %c0_3 = arith.constant 0 : index
    %4 = vector.load %arg4[%c0_2, %c0_3] : memref<32x32xf8E4M3FN, #tpu.memory_space<vmem>>, vector<32x32xf8E4M3FN>
    %5 = arith.extf %4 : vector<32x32xf8E4M3FN> to vector<32x32xbf16>
    %c0_4 = arith.constant 0 : index
    %c0_5 = arith.constant 0 : index
    %6 = vector.load %arg6[%c0_4, %c0_5] : memref<16x32xf32, #tpu.memory_space<vmem>>, vector<16x32xf32>
    %cst = arith.constant dense<0.000000e+00> : vector<16x32xf32>
    %7 = tpu.matmul %3, %5, %cst {dimension_numbers = #tpu.dot_dimension_numbers<[1], [1], [0], [0], [0, 0, 1, 0], [], []>} : vector<16x32xbf16>, vector<32x32xbf16>, vector<16x32xf32> -> vector<16x32xf32>
    %8 = arith.addf %6, %7 : vector<16x32xf32>
    %c0_6 = arith.constant 0 : index
    %c0_7 = arith.constant 0 : index
    %9 = vector.load %arg6[%c0_6, %c0_7] : memref<16x32xf32, #tpu.memory_space<vmem>>, vector<16x32xf32>
    tpu.vector_store %arg6[%c0_6, %c0_7], %8 {strides = array<i32>} : memref<16x32xf32, #tpu.memory_space<vmem>>, vector<16x32xf32>,
    return
  }
  func.func @transform_0(%arg0: i32, %arg1: i32, %arg2: i32) -> (i32, i32) {
    %c0_i32 = arith.constant 0 : i32
    return %arg0, %arg2 : i32, i32
  }
  func.func @transform_1(%arg0: i32, %arg1: i32, %arg2: i32) -> (i32, i32) {
    %c0_i32 = arith.constant 0 : i32
    return %arg1, %arg2 : i32, i32
  }
  func.func @transform_2(%arg0: i32, %arg1: i32, %arg2: i32) -> (i32, i32) {
    %c0_i32 = arith.constant 0 : i32
    %c0_i32_0 = arith.constant 0 : i32
    return %c0_i32, %arg1 : i32, i32
  }
  func.func @transform_3(%arg0: i32, %arg1: i32, %arg2: i32) -> (i32, i32) {
    %c0_i32 = arith.constant 0 : i32
    return %arg0, %arg1 : i32, i32
  }
}

</mosaic_0001>

<bundles_post_ra>
// kernel: tpu_custom_call.1
= control target key start
LH: loop header
LB: loop body
LE: loop exit
PB: predicated region body
PF: predicated region fallthrough
CT: control target
= control target key end

     0   :  { %8 = vsyncpa [#allocation3], 0  ;;  %s413_s0 = inlined_call_operand.hbm [shape: bf16[16,32], index: 0, kind: input, shape index: {}]   ;;  %s414_s1 = inlined_call_operand.hbm [shape: f8e4m3fn[32,32], index: 1, kind: input, shape index: {}]   ;;  %s415_s2 = inlined_call_operand.vmem [shape: f32[1,32], index: 2, kind: input, shape index: {}]   ;;  %s416_s3 = inlined_call_operand.hbm [shape: f32[16,32], index: 3, kind: output, shape index: {}]  }
   0x1   :  { %9 = vsyncpa [#allocation6], 0 }
   0x2   :  { %10 = vsyncpa [#allocation4], 0  ;;  %s353_s12 = smov [#allocation2]  }
   0x3   :  { %s16_s13 = sshll.u32 %s353_s12, 4  ;;  %s17_s13 = int_to_ptr.vmem [resolvable:$true] %s16_s13 }
   0x4   :  { %s295_s14 = scalar_lea.vmem %s17_s13, 128  ;;  %p300_p1 = scmp.lt.s32.totalorder %s17_s13, %s17_s13 }
   0x5   :  { %p296_p0 = scmp.ne.s32.totalorder %s17_s13, %s295_s14  ;;  %p301_p2 = scmp.lt.s32.totalorder %s295_s14, %s295_s14 }
   0x7   :  { %p302_p3 = por %p301_p2, %p300_p1 }
   0x9   :  { %p303_p4 = pnand %p302_p3, %p296_p0 }
   0xb   :  { %306 = shalt.err (!%p303_p4)
}
   0xc   :  { %s354_s15 = smov 64   ;;  %s355_s16 = smov 4  }
   0xd   :  { %22 = dma.hbm_to_vmem [thread:$0]  %s413_s0, 128, %s17_s13, [#allocation3], %s354_s15, %s354_s15, %s355_s16  }
   0xe   :  { %s356_s19 = smov [#allocation5]  }
   0xf   :  { %s29_s20 = sshll.u32 %s356_s19, 4  ;;  %s30_s20 = int_to_ptr.vmem [resolvable:$true] %s29_s20 }
  0x10   :  { %s315_s21 = scalar_lea.vmem %s30_s20, 128  ;;  %p320_p6 = scmp.lt.s32.totalorder %s30_s20, %s30_s20 }
  0x11   :  { %p316_p5 = scmp.ne.s32.totalorder %s30_s20, %s315_s21  ;;  %p321_p7 = scmp.lt.s32.totalorder %s315_s21, %s315_s21 }
  0x13   :  { %p322_p8 = por %p321_p7, %p320_p6 }
  0x15   :  { %p323_p9 = pnand %p322_p8, %p316_p5 }
  0x17   :  { %326 = shalt.err (!%p323_p9)
}
  0x18   :  { %32 = dma.hbm_to_vmem [thread:$0]  %s414_s1, 128, %s30_s20, [#allocation6]  }
  0x19   :  { %347 = dma.done.wait [#allocation3], 128  }
  0x1a   :  { %348 = vsyncadd [#allocation3], 4294967168 }
  0x1b   :  { %349 = dma.done.wait [#allocation6], 128  }
  0x1c   :  { %350 = vsyncadd [#allocation6], 4294967168  ;;  %vm53_vm0 = vcmask 261120   ;;  %v56_v0 = vld [vmem:[#allocation2] sm:$0xf]  ;;  %v58_v2 = vld [vmem:[#allocation5] sm:$0xff] }
  0x1d   :  { %v57_v1 = vld [vmem:[#allocation2 + $0x4] sm:$0xf]  ;;  %v264_v3 = vld [vmem:[%s415_s2] ss:$0 sm:$0xff] }
  0x1e   :  { %54 = vst.msk [vmem:[#allocation7] sm:$0xff] %vm53_vm0, %v264_v3  ;;  %55 = vst.msk [vmem:[#allocation7 + $0x8] sm:$0xff] %vm53_vm0, %v264_v3 }
  0x1f   :  { %59 = vst [vmem:[#allocation8] sm:$0xff] %v58_v2 }
  0x26   :  { %v60_v4 = vld [vmem:[#allocation8] sm:$0x3] }
  0x27   :  { %v61_v5 = vunpack.c.0.f8e4m3b11 %v60_v4 }
  0x29   :  { %v65_v6 = vand.u32 2147483647, %v61_v5  ;;  %vm67_vm1 = vcmp.ne.f32.partialorder %v61_v5, %v61_v5  ;;  %v68_v7 = vmul.f32 16.0, %v61_v5 }
  0x2b   :  { %vm393_vm2 = vcmp.gt.f32.partialorder %v65_v6, 29.0  ;;  %v69_v9 = vsel %vm67_vm1, -0.0, %v68_v7 }
  0x2c   :  { %v70_v10 = vsel %vm393_vm2, nan, %v69_v9 }
  0x2d   :  { %89 = vst [vmem:[#allocation9] sm:$0xff] %v58_v2 }
  0x34   :  { %v91_v11 = vld [vmem:[#allocation9 + $0x2] sm:$0x3] }
  0x35   :  { %v92_v12 = vunpack.c.0.f8e4m3b11 %v91_v11 }
  0x37   :  { %v96_v13 = vand.u32 2147483647, %v92_v12  ;;  %vm98_vm3 = vcmp.ne.f32.partialorder %v92_v12, %v92_v12  ;;  %v99_v14 = vmul.f32 16.0, %v92_v12 }
  0x39   :  { %vm399_vm4 = vcmp.gt.f32.partialorder %v96_v13, 29.0  ;;  %v100_v16 = vsel %vm98_vm3, -0.0, %v99_v14 }
  0x3a   :  { %v101_v17 = vsel %vm399_vm4, nan, %v100_v16 }
  0x3b   :  { %120 = vst [vmem:[#allocation10] sm:$0xff] %v58_v2 }
  0x42   :  { %v122_v18 = vld [vmem:[#allocation10 + $0x4] sm:$0x3] }
  0x43   :  { %v123_v19 = vunpack.c.0.f8e4m3b11 %v122_v18 }
  0x45   :  { %v127_v20 = vand.u32 2147483647, %v123_v19  ;;  %vm129_vm5 = vcmp.ne.f32.partialorder %v123_v19, %v123_v19  ;;  %v130_v21 = vmul.f32 16.0, %v123_v19 }
  0x47   :  { %vm128_vm6 = vcmp.gt.f32.partialorder %v127_v20, 29.0  ;;  %v131_v22 = vsel %vm129_vm5, -0.0, %v130_v21 }
  0x48   :  { %v132_v23 = vsel %vm128_vm6, nan, %v131_v22 }
  0x49   :  { %151 = vst [vmem:[#allocation11] sm:$0xff] %v58_v2  ;;  %v357_v31 = vmov 0.0   ;;  %vm358_vm9 = vmmov 0   ;;  %v182_v33 = vpack.c.bf16 %v101_v17, %v70_v10  ;;  %v265_v35 = vcombine.low %v56_v0, %v57_v1  ;;  %v184_v36 = vld [vmem:[#allocation7] sm:$0xff]  ;;  %s359_s1 = smov [#allocation7]   ;;  %v185_v40 = vld [vmem:[#allocation7 + $0x8] sm:$0xff] }
  0x4a   :  { %270 = vmatprep.subr.bf16.mxu0 %v357_v31  ;;  %274 = vmatprep.mubr.msk.bf16.mxu0 %vm358_vm9, %v357_v31  ;;  %s251_s2 = sshll.u32 %s359_s1, 4  ;;  %s252_s2 = int_to_ptr.vmem [resolvable:$true] %s251_s2 }
  0x4b   :  { %v196_v34 = vsel %vm53_vm0, %v182_v33, 0  ;;  %s327_s25 = scalar_lea.vmem %s252_s2, 256  ;;  %p332_p11 = scmp.lt.s32.totalorder %s252_s2, %s252_s2 }
  0x4c   :  { %p328_p10 = scmp.ne.s32.totalorder %s252_s2, %s327_s25  ;;  %p333_p12 = scmp.lt.s32.totalorder %s327_s25, %s327_s25 }
  0x4e   :  { %p334_p13 = por %p333_p12, %p332_p11 }
  0x50   :  { %v153_v24 = vld [vmem:[#allocation11 + $0x6] sm:$0x3]  ;;  %p335_p0 = pnand %p334_p13, %p328_p10 }
  0x51   :  { %v154_v25 = vunpack.c.0.f8e4m3b11 %v153_v24 }
  0x53   :  { %v158_v26 = vand.u32 2147483647, %v154_v25  ;;  %vm160_vm7 = vcmp.ne.f32.partialorder %v154_v25, %v154_v25  ;;  %v161_v27 = vmul.f32 16.0, %v154_v25 }
  0x55   :  { %vm159_vm8 = vcmp.gt.f32.partialorder %v158_v26, 29.0  ;;  %v162_v28 = vsel %vm160_vm7, -0.0, %v161_v27 }
  0x56   :  { %v163_v29 = vsel %vm159_vm8, nan, %v162_v28 }
  0x57   :  { %v183_v30 = vpack.c.bf16 %v163_v29, %v132_v23 }
  0x59   :  { %v199_v32 = vsel %vm53_vm0, %v183_v30, 0 }
  0x5a   :  { %271 = vmatpush3.bf16.xpose.msra.mxu0 %v199_v32 }
  0x5b   :  { %272 = vmatprep.subr.bf16.mxu0 %v357_v31 }
  0x62   :  { %273 = vmatpush3.bf16.xpose.msra.mxu0 %v196_v34 }
  0x69   :  { %275 = vmatmul.mubr.msk.bf16.vlgmr.msra.gmra.mxu0 %vm53_vm0, %v265_v35 }
 0x129   :  { %v235_v37 = vpop.f32.mrf.mxu0 }
 0x12a   :  { %v242_v38 = vadd.f32 %v235_v37, %v184_v36 }
 0x12b   :  { %v276_v39 = vpop.f32.mrf.mxu0 }
 0x12c   :  { %244 = vst.msk [vmem:[#allocation7] sm:$0xff] %vm53_vm0, %v242_v38 }
 0x12d   :  { %v238_v41 = vpop.f32.mrf.mxu0 }
 0x12e   :  { %v243_v42 = vadd.f32 %v238_v41, %v185_v40 }
 0x12f   :  { %v277_v43 = vpop.f32.mrf.mxu0 }
 0x130   :  { %245 = vst.msk [vmem:[#allocation7 + $0x8] sm:$0xff] %vm53_vm0, %v243_v42 }
 0x131   :  { %338 = shalt.err (!%p335_p0)
}
 0x132   :  { %s360_s26 = smov 128   ;;  %s361_s27 = smov 8  }
 0x133   :  { %257 = dma.vmem_to_hbm [thread:$0]  %s252_s2, 256, %s416_s3, [#allocation4], %s360_s26, %s360_s26, %s361_s27  }
 0x134   :  { %351 = dma.done.wait [#allocation4], 256  }
 0x135   :  { %352 = vsyncadd [#allocation4], 4294967040 }
 0x136   :  { %261 = vsyncpa [#allocation3], 1 }
 0x137   :  { %262 = vsyncpa [#allocation6], 1 }
 0x138   :  { %263 = vsyncpa [#allocation4], 1 }

// kernel: tpu_custom_call.1
= control target key start
LH: loop header
LB: loop body
LE: loop exit
PB: predicated region body
PF: predicated region fallthrough
CT: control target
= control target key end

     0   :  { %8 = vsyncpa [#allocation3], 0  ;;  %s413_s0 = inlined_call_operand.hbm [shape: bf16[16,32], index: 0, kind: input, shape index: {}]   ;;  %s414_s1 = inlined_call_operand.hbm [shape: f8e4m3fn[32,32], index: 1, kind: input, shape index: {}]   ;;  %s415_s2 = inlined_call_operand.vmem [shape: f32[1,32], index: 2, kind: input, shape index: {}]   ;;  %s416_s3 = inlined_call_operand.hbm [shape: f32[16,32], index: 3, kind: output, shape index: {}]  }
   0x1   :  { %9 = vsyncpa [#allocation6], 0 }
   0x2   :  { %10 = vsyncpa [#allocation4], 0  ;;  %s353_s12 = smov [#allocation2]  }
   0x3   :  { %s16_s13 = sshll.u32 %s353_s12, 4  ;;  %s17_s13 = int_to_ptr.vmem [resolvable:$true] %s16_s13 }
   0x4   :  { %s295_s14 = scalar_lea.vmem %s17_s13, 128  ;;  %p300_p1 = scmp.lt.s32.totalorder %s17_s13, %s17_s13 }
   0x5   :  { %p296_p0 = scmp.ne.s32.totalorder %s17_s13, %s295_s14  ;;  %p301_p2 = scmp.lt.s32.totalorder %s295_s14, %s295_s14 }
   0x7   :  { %p302_p3 = por %p301_p2, %p300_p1 }
   0x9   :  { %p303_p4 = pnand %p302_p3, %p296_p0 }
   0xb   :  { %306 = shalt.err (!%p303_p4)
}
   0xc   :  { %s354_s15 = smov 64   ;;  %s355_s16 = smov 4  }
   0xd   :  { %22 = dma.hbm_to_vmem [thread:$0]  %s413_s0, 128, %s17_s13, [#allocation3], %s354_s15, %s354_s15, %s355_s16  }
   0xe   :  { %s356_s19 = smov [#allocation5]  }
   0xf   :  { %s29_s20 = sshll.u32 %s356_s19, 4  ;;  %s30_s20 = int_to_ptr.vmem [resolvable:$true] %s29_s20 }
  0x10   :  { %s315_s21 = scalar_lea.vmem %s30_s20, 128  ;;  %p320_p6 = scmp.lt.s32.totalorder %s30_s20, %s30_s20 }
  0x11   :  { %p316_p5 = scmp.ne.s32.totalorder %s30_s20, %s315_s21  ;;  %p321_p7 = scmp.lt.s32.totalorder %s315_s21, %s315_s21 }
  0x13   :  { %p322_p8 = por %p321_p7, %p320_p6 }
  0x15   :  { %p323_p9 = pnand %p322_p8, %p316_p5 }
  0x17   :  { %326 = shalt.err (!%p323_p9)
}
  0x18   :  { %32 = dma.hbm_to_vmem [thread:$0]  %s414_s1, 128, %s30_s20, [#allocation6]  }
  0x19   :  { %347 = dma.done.wait [#allocation3], 128  }
  0x1a   :  { %348 = vsyncadd [#allocation3], 4294967168 }
  0x1b   :  { %349 = dma.done.wait [#allocation6], 128  }
  0x1c   :  { %350 = vsyncadd [#allocation6], 4294967168  ;;  %vm53_vm0 = vcmask 261120   ;;  %v56_v0 = vld [vmem:[#allocation2] sm:$0xf]  ;;  %v58_v2 = vld [vmem:[#allocation5] sm:$0xff] }
  0x1d   :  { %v57_v1 = vld [vmem:[#allocation2 + $0x4] sm:$0xf]  ;;  %v264_v3 = vld [vmem:[%s415_s2] ss:$0 sm:$0xff] }
  0x1e   :  { %54 = vst.msk [vmem:[#allocation7] sm:$0xff] %vm53_vm0, %v264_v3  ;;  %55 = vst.msk [vmem:[#allocation7 + $0x8] sm:$0xff] %vm53_vm0, %v264_v3 }
  0x1f   :  { %59 = vst [vmem:[#allocation8] sm:$0xff] %v58_v2 }
  0x26   :  { %v60_v4 = vld [vmem:[#allocation8] sm:$0x3] }
  0x27   :  { %v61_v5 = vunpack.c.0.f8e4m3b11 %v60_v4 }
  0x29   :  { %v65_v6 = vand.u32 2147483647, %v61_v5  ;;  %vm67_vm1 = vcmp.ne.f32.partialorder %v61_v5, %v61_v5  ;;  %v68_v7 = vmul.f32 16.0, %v61_v5 }
  0x2b   :  { %vm393_vm2 = vcmp.gt.f32.partialorder %v65_v6, 29.0  ;;  %v69_v9 = vsel %vm67_vm1, -0.0, %v68_v7 }
  0x2c   :  { %v70_v10 = vsel %vm393_vm2, nan, %v69_v9 }
  0x2d   :  { %89 = vst [vmem:[#allocation9] sm:$0xff] %v58_v2 }
  0x34   :  { %v91_v11 = vld [vmem:[#allocation9 + $0x2] sm:$0x3] }
  0x35   :  { %v92_v12 = vunpack.c.0.f8e4m3b11 %v91_v11 }
  0x37   :  { %v96_v13 = vand.u32 2147483647, %v92_v12  ;;  %vm98_vm3 = vcmp.ne.f32.partialorder %v92_v12, %v92_v12  ;;  %v99_v14 = vmul.f32 16.0, %v92_v12 }
  0x39   :  { %vm399_vm4 = vcmp.gt.f32.partialorder %v96_v13, 29.0  ;;  %v100_v16 = vsel %vm98_vm3, -0.0, %v99_v14 }
  0x3a   :  { %v101_v17 = vsel %vm399_vm4, nan, %v100_v16 }
  0x3b   :  { %120 = vst [vmem:[#allocation10] sm:$0xff] %v58_v2 }
  0x42   :  { %v122_v18 = vld [vmem:[#allocation10 + $0x4] sm:$0x3] }
  0x43   :  { %v123_v19 = vunpack.c.0.f8e4m3b11 %v122_v18 }
  0x45   :  { %v127_v20 = vand.u32 2147483647, %v123_v19  ;;  %vm129_vm5 = vcmp.ne.f32.partialorder %v123_v19, %v123_v19  ;;  %v130_v21 = vmul.f32 16.0, %v123_v19 }
  0x47   :  { %vm128_vm6 = vcmp.gt.f32.partialorder %v127_v20, 29.0  ;;  %v131_v22 = vsel %vm129_vm5, -0.0, %v130_v21 }
  0x48   :  { %v132_v23 = vsel %vm128_vm6, nan, %v131_v22 }
  0x49   :  { %151 = vst [vmem:[#allocation11] sm:$0xff] %v58_v2  ;;  %v357_v31 = vmov 0.0   ;;  %vm358_vm9 = vmmov 0   ;;  %v182_v33 = vpack.c.bf16 %v101_v17, %v70_v10  ;;  %v265_v35 = vcombine.low %v56_v0, %v57_v1  ;;  %v184_v36 = vld [vmem:[#allocation7] sm:$0xff]  ;;  %s359_s1 = smov [#allocation7]   ;;  %v185_v40 = vld [vmem:[#allocation7 + $0x8] sm:$0xff] }
  0x4a   :  { %270 = vmatprep.subr.bf16.mxu0 %v357_v31  ;;  %274 = vmatprep.mubr.msk.bf16.mxu0 %vm358_vm9, %v357_v31  ;;  %s251_s2 = sshll.u32 %s359_s1, 4  ;;  %s252_s2 = int_to_ptr.vmem [resolvable:$true] %s251_s2 }
  0x4b   :  { %v196_v34 = vsel %vm53_vm0, %v182_v33, 0  ;;  %s327_s25 = scalar_lea.vmem %s252_s2, 256  ;;  %p332_p11 = scmp.lt.s32.totalorder %s252_s2, %s252_s2 }
  0x4c   :  { %p328_p10 = scmp.ne.s32.totalorder %s252_s2, %s327_s25  ;;  %p333_p12 = scmp.lt.s32.totalorder %s327_s25, %s327_s25 }
  0x4e   :  { %p334_p13 = por %p333_p12, %p332_p11 }
  0x50   :  { %v153_v24 = vld [vmem:[#allocation11 + $0x6] sm:$0x3]  ;;  %p335_p0 = pnand %p334_p13, %p328_p10 }
  0x51   :  { %v154_v25 = vunpack.c.0.f8e4m3b11 %v153_v24 }
  0x53   :  { %v158_v26 = vand.u32 2147483647, %v154_v25  ;;  %vm160_vm7 = vcmp.ne.f32.partialorder %v154_v25, %v154_v25  ;;  %v161_v27 = vmul.f32 16.0, %v154_v25 }
  0x55   :  { %vm159_vm8 = vcmp.gt.f32.partialorder %v158_v26, 29.0  ;;  %v162_v28 = vsel %vm160_vm7, -0.0, %v161_v27 }
  0x56   :  { %v163_v29 = vsel %vm159_vm8, nan, %v162_v28 }
  0x57   :  { %v183_v30 = vpack.c.bf16 %v163_v29, %v132_v23 }
  0x59   :  { %v199_v32 = vsel %vm53_vm0, %v183_v30, 0 }
  0x5a   :  { %271 = vmatpush3.bf16.xpose.msra.mxu0 %v199_v32 }
  0x5b   :  { %272 = vmatprep.subr.bf16.mxu0 %v357_v31 }
  0x62   :  { %273 = vmatpush3.bf16.xpose.msra.mxu0 %v196_v34 }
  0x69   :  { %275 = vmatmul.mubr.msk.bf16.vlgmr.msra.gmra.mxu0 %vm53_vm0, %v265_v35 }
 0x129   :  { %v235_v37 = vpop.f32.mrf.mxu0 }
 0x12a   :  { %v242_v38 = vadd.f32 %v235_v37, %v184_v36 }
 0x12b   :  { %v276_v39 = vpop.f32.mrf.mxu0 }
 0x12c   :  { %244 = vst.msk [vmem:[#allocation7] sm:$0xff] %vm53_vm0, %v242_v38 }
 0x12d   :  { %v238_v41 = vpop.f32.mrf.mxu0 }
 0x12e   :  { %v243_v42 = vadd.f32 %v238_v41, %v185_v40 }
 0x12f   :  { %v277_v43 = vpop.f32.mrf.mxu0 }
 0x130   :  { %245 = vst.msk [vmem:[#allocation7 + $0x8] sm:$0xff] %vm53_vm0, %v243_v42 }
 0x131   :  { %338 = shalt.err (!%p335_p0)
}
 0x132   :  { %s360_s26 = smov 128   ;;  %s361_s27 = smov 8  }
 0x133   :  { %257 = dma.vmem_to_hbm [thread:$0]  %s252_s2, 256, %s416_s3, [#allocation4], %s360_s26, %s360_s26, %s361_s27  }
 0x134   :  { %351 = dma.done.wait [#allocation4], 256  }
 0x135   :  { %352 = vsyncadd [#allocation4], 4294967040 }
 0x136   :  { %261 = vsyncpa [#allocation3], 1 }
 0x137   :  { %262 = vsyncpa [#allocation6], 1 }
 0x138   :  { %263 = vsyncpa [#allocation4], 1 }

</bundles_post_ra>
